<compile_context>
chip_gen: v5e
topology: v5e:2x2
jax: 0.10.0
libtpu: 0.0.40
codegen_flags: <defaults>
</compile_context>

<pallas_src>
import jax
import jax.numpy as jnp
from jax.experimental import pallas as pl
from jax.experimental.pallas import tpu as pltpu


# ----------------------------------------------------------------------------
# Stage 1: recurrence kernel — single invocation, capped-unroll time loop
# ----------------------------------------------------------------------------
def rnn_recurrence_kernel(x_ref, w_ih_ref, w_hh_ref, b_ref, hs_ref):
    """Full tanh-RNN recurrence.

    x_ref   : (T, Bp, Ep)  bf16, time-major padded inputs
    w_ih_ref: (Ep, Hp)     bf16
    w_hh_ref: (Hp, Hp)     bf16
    b_ref   : (1, Hp)      f32   (b_ih + b_hh)
    hs_ref  : (T, Bp, Hp)  bf16  all hidden states (output)
    """
    T, Bp, _ = x_ref.shape
    Hp = hs_ref.shape[2]

    # Hoist the bias broadcast out of the loop (JAX does not CSE broadcast_in_dim).
    b_b = jnp.broadcast_to(b_ref[...], (Bp, Hp))

    def step(t, h_prev):
        x_t = x_ref[t]                                     # (Bp, Ep) bf16
        # Two accumulating MXU dots — no per-step concat copy.  Weights are
        # read straight from the VMEM refs (no value-hoist -> no vreg spill).
        pre = (
            jnp.dot(x_t, w_ih_ref[...], preferred_element_type=jnp.float32)
            + jnp.dot(h_prev.astype(jnp.bfloat16), w_hh_ref[...],
                      preferred_element_type=jnp.float32)
            + b_b
        )
        h_new = jnp.tanh(pre)                              # f32 on the EUP
        hs_ref[t] = h_new.astype(hs_ref.dtype)             # bf16 store
        return h_new                                       # f32 carry

    h0 = jnp.zeros((Bp, Hp), jnp.float32)
    unroll = T if T <= 8 else 4                            # cap unroll for long seqs
    jax.lax.fori_loop(0, T, step, h0, unroll=unroll)


# ----------------------------------------------------------------------------
# Stage 2: hoisted output projection — lane-dense parallel tiled matmul
#          (input is batch-major, so the output is already batch-first)
# ----------------------------------------------------------------------------
def proj_kernel(h_ref, w_ref, b_ref, o_ref):
    """o = h @ W_out + b_out for one (tm, tn) output tile (bf16 in, f32 out)."""
    o_ref[...] = (
        jnp.dot(h_ref[...], w_ref[...], preferred_element_type=jnp.float32)
        + b_ref[...]
    ).astype(o_ref.dtype)


# ----------------------------------------------------------------------------
# Wrapper: DecoderVanilla.forward(features, captions)
# ----------------------------------------------------------------------------
def _round_up(n, m):
    return ((n + m - 1) // m) * m


def _vmem_limit(need_bytes, floor=32 * 1024 * 1024, cap=100 * 1024 * 1024):
    """Scoped-VMEM request: generous headroom, never below the chip defaults."""
    return int(min(max(2 * need_bytes + (4 << 20), floor), cap))


def decoder_vanilla_forward(features, captions, params):
    """features: (B, E) f32; captions: (B, Tc) int32 -> logits (B, Tc, V) f32."""
    emb_table = params["embedding"]                        # (Vocab, E)
    B, E = features.shape
    H = params["w_hh"].shape[0]
    V = params["w_out"].shape[1]

    # Build the RNN input directly time-major: (T, B, E).
    cap = captions[:, :-1]                                 # (B, Tc-1)
    embed_tm = jnp.take(emb_table, cap.T, axis=0)          # (Tc-1, B, E)
    x_tm = jnp.concatenate([features[None, :, :], embed_tm], axis=0)
    T = x_tm.shape[0]                                      # == Tc

    # Pad to sublane (8) / lane (128) multiples; zero padding is inert.
    Bp = _round_up(B, 8)
    Ep = _round_up(E, 128)
    Hp = _round_up(H, 128)
    Vp = _round_up(V, 128)

    # bf16 MXU operands; f32 biases (added post-dot in f32 inside the kernels).
    x_p = jnp.zeros((T, Bp, Ep), jnp.bfloat16).at[:, :B, :E].set(
        x_tm.astype(jnp.bfloat16))
    w_ih = jnp.zeros((Ep, Hp), jnp.bfloat16).at[:E, :H].set(
        params["w_ih"].astype(jnp.bfloat16))
    w_hh = jnp.zeros((Hp, Hp), jnp.bfloat16).at[:H, :H].set(
        params["w_hh"].astype(jnp.bfloat16))
    b_rnn = jnp.zeros((1, Hp), jnp.float32).at[0, :H].set(
        params["b_ih"] + params["b_hh"])
    w_out = jnp.zeros((Hp, Vp), jnp.bfloat16).at[:H, :V].set(
        params["w_out"].astype(jnp.bfloat16))
    b_out = jnp.zeros((1, Vp), jnp.float32).at[0, :V].set(params["b_out"])

    # ---- Stage 1: recurrence (single pallas_call, operands VMEM-resident) ----
    s1_bytes = 2 * (T * Bp * Ep + T * Bp * Hp + Ep * Hp + Hp * Hp) + 4 * Hp + 4 * Bp * Hp
    hs = pl.pallas_call(
        rnn_recurrence_kernel,
        out_shape=jax.ShapeDtypeStruct((T, Bp, Hp), jnp.bfloat16),
        compiler_params=pltpu.CompilerParams(
            vmem_limit_bytes=_vmem_limit(s1_bytes)),
    )(x_p, w_ih, w_hh, b_rnn)

    # ---- Between stages: transpose the SMALL hs tensor to batch-major --------
    # Transposing hs (T*B*H bf16) instead of the logits (T*B*V f32) removes the
    # big post-kernel HBM transpose pass; Stage 2 then writes logits directly
    # in the final batch-first layout.  Only the real B rows are projected.
    M = B * T
    hs_bt = jnp.transpose(hs[:, :B, :], (1, 0, 2)).reshape(M, Hp)   # (B*T, Hp)

    tm = 256 if M >= 256 else _round_up(M, 8)   # tm >= 256 when M allows it
    Mp = _round_up(M, tm)                       # pad M once (inert zero rows)
    if Mp != M:
        hs_bt = jnp.pad(hs_bt, ((0, Mp - M), (0, 0)))
    tn = 512 if Vp % 512 == 0 else (256 if Vp % 256 == 0 else 128)
    # NOTE: on v6e (128 MiB VMEM) tm/tn can be grown to 512/1024 and W_out
    # given pipeline_mode=pl.Buffered(3); kept at 256/512 to stay within
    # v7x's 64 MiB budget without re-sweeping.

    # ---- Stage 2: projection, (Mp, Hp) @ (Hp, Vp), parallel grid -------------
    s2_bytes = 2 * (2 * tm * Hp + 2 * Hp * tn + 4 * tn + 4 * tm * tn)
    logits_flat = pl.pallas_call(
        proj_kernel,
        out_shape=jax.ShapeDtypeStruct((Mp, Vp), jnp.float32),
        grid=(Mp // tm, Vp // tn),
        in_specs=[
            pl.BlockSpec((tm, Hp), lambda i, j: (i, 0)),   # hidden states (bf16)
            pl.BlockSpec((Hp, tn), lambda i, j: (0, j)),   # W_out V-tile (bf16)
            pl.BlockSpec((1, tn), lambda i, j: (0, j)),    # b_out V-tile (f32)
        ],
        out_specs=pl.BlockSpec((tm, tn), lambda i, j: (i, j)),
        compiler_params=pltpu.CompilerParams(
            dimension_semantics=("parallel", "parallel"),
            vmem_limit_bytes=_vmem_limit(s2_bytes)),
    )(hs_bt, w_out, b_out)

    # Already batch-first: strip padding and reshape (contiguous, no transpose).
    logits = logits_flat[:M, :V].reshape(B, T, V)
    return logits


# ----------------------------------------------------------------------------
# Parameters + pure-JAX reference
# ----------------------------------------------------------------------------
def init_params(key, embed_size, hidden_size, vocab_size):
    """Deterministic parameter init (torch-like uniform ranges, synthetic)."""
    ks = jax.random.split(key, 7)
    k_rnn = 1.0 / jnp.sqrt(hidden_size)
    k_lin = 1.0 / jnp.sqrt(hidden_size)
    u = lambda k, shape, bound: jax.random.uniform(
        k, shape, jnp.float32, -bound, bound)
    return {
        "embedding": jax.random.normal(ks[0], (vocab_size, embed_size),
                                       jnp.float32),
        # stored transposed relative to torch (so kernels do x @ W)
        "w_ih": u(ks[1], (embed_size, hidden_size), k_rnn),
        "w_hh": u(ks[2], (hidden_size, hidden_size), k_rnn),
        "b_ih": u(ks[3], (hidden_size,), k_rnn),
        "b_hh": u(ks[4], (hidden_size,), k_rnn),
        "w_out": u(ks[5], (hidden_size, vocab_size), k_lin),
        "b_out": u(ks[6], (vocab_size,), k_lin),
    }


def reference_forward(features, captions, params):
    """Pure-JAX f32 reference (lax.scan) to validate the kernels."""
    cap = captions[:, :-1]
    embed = jnp.take(params["embedding"], cap, axis=0)
    x = jnp.concatenate([features[:, None, :], embed], axis=1)  # (B, T, E)
    b = params["b_ih"] + params["b_hh"]

    def step(h, x_t):
        h_new = jnp.tanh(x_t @ params["w_ih"] + h @ params["w_hh"] + b)
        return h_new, h_new

    h0 = jnp.zeros((x.shape[0], params["w_hh"].shape[0]), jnp.float32)
    _, hs = jax.lax.scan(step, h0, jnp.transpose(x, (1, 0, 2)))   # (T, B, H)
    outs = hs @ params["w_out"] + params["b_out"]                 # (T, B, V)
    return jnp.transpose(outs, (1, 0, 2))


if __name__ == "__main__":
    B, Tc = 4, 8           # batch, caption length (seq fed to RNN = Tc)
    E, H, V = 32, 32, 64   # embed_size, hidden_size, vocab_size

    key = jax.random.PRNGKey(0)
    k_feat, k_cap, k_par = jax.random.split(key, 3)

    params = init_params(k_par, E, H, V)
    features = jax.random.normal(k_feat, (B, E), jnp.float32)
    captions = jax.random.randint(k_cap, (B, Tc), 0, V, jnp.int32)

    out = jax.jit(decoder_vanilla_forward)(features, captions, params)
    out = jax.block_until_ready(out)

    ref = reference_forward(features, captions, params)
    assert out.shape == (B, Tc, V)
    # bf16 matmul inputs (f32 accumulation / f32 tanh) vs an all-f32 reference.
    assert jnp.allclose(out, ref, atol=5e-2, rtol=5e-2), float(
        jnp.max(jnp.abs(out - ref)))

    print("KERNEL_OK")
</pallas_src>

<mosaic_0001>
module attributes {stable_mosaic.version = 11 : i64} {
  func.func @rnn_recurrence_kernel(%arg0: memref<8x8x128xbf16, #tpu.memory_space<vmem>>, %arg1: memref<128x128xbf16, #tpu.memory_space<vmem>>, %arg2: memref<128x128xbf16, #tpu.memory_space<vmem>>, %arg3: memref<1x128xf32, #tpu.memory_space<vmem>>, %arg4: memref<8x8x128xbf16, #tpu.memory_space<vmem>>) attributes {dimension_semantics = [], scalar_prefetch = 0 : i64, scratch_operands = 0 : i64, tpu.core_type = #tpu.core_type<tc>} {
    %c0 = arith.constant 0 : index
    %c0_0 = arith.constant 0 : index
    %0 = vector.load %arg3[%c0, %c0_0] : memref<1x128xf32, #tpu.memory_space<vmem>>, vector<1x128xf32>
    %1 = vector.shape_cast %0 : vector<1x128xf32> to vector<1x128xf32>
    %2 = vector.broadcast %1 : vector<1x128xf32> to vector<8x128xf32>
    %cst = arith.constant 0.000000e+00 : f32
    %3 = vector.broadcast %cst : f32 to vector<8x128xf32>
    %c0_i32 = arith.constant 0 : i32
    %4 = arith.index_cast %c0_i32 : i32 to index
    %c0_1 = arith.constant 0 : index
    %c0_2 = arith.constant 0 : index
    %5 = vector.load %arg0[%4, %c0_1, %c0_2] : memref<8x8x128xbf16, #tpu.memory_space<vmem>>, vector<1x8x128xbf16>
    %6 = vector.shape_cast %5 : vector<1x8x128xbf16> to vector<8x128xbf16>
    %c0_3 = arith.constant 0 : index
    %c0_4 = arith.constant 0 : index
    %7 = vector.load %arg1[%c0_3, %c0_4] : memref<128x128xbf16, #tpu.memory_space<vmem>>, vector<128x128xbf16>
    %cst_5 = arith.constant dense<0.000000e+00> : vector<8x128xf32>
    %8 = tpu.matmul %6, %7, %cst_5 {dimension_numbers = #tpu.dot_dimension_numbers<[1], [0], [0], [1], [0, 0, 1, 1], [], []>} : vector<8x128xbf16>, vector<128x128xbf16>, vector<8x128xf32> -> vector<8x128xf32>
    %9 = arith.truncf %3 : vector<8x128xf32> to vector<8x128xbf16>
    %c0_6 = arith.constant 0 : index
    %c0_7 = arith.constant 0 : index
    %10 = vector.load %arg2[%c0_6, %c0_7] : memref<128x128xbf16, #tpu.memory_space<vmem>>, vector<128x128xbf16>
    %cst_8 = arith.constant dense<0.000000e+00> : vector<8x128xf32>
    %11 = tpu.matmul %9, %10, %cst_8 {dimension_numbers = #tpu.dot_dimension_numbers<[1], [0], [0], [1], [0, 0, 1, 1], [], []>} : vector<8x128xbf16>, vector<128x128xbf16>, vector<8x128xf32> -> vector<8x128xf32>
    %12 = arith.addf %8, %11 : vector<8x128xf32>
    %13 = arith.addf %12, %2 : vector<8x128xf32>
    %14 = math.tanh %13 : vector<8x128xf32>
    %15 = arith.truncf %14 : vector<8x128xf32> to vector<8x128xbf16>
    %16 = arith.index_cast %c0_i32 : i32 to index
    %c0_9 = arith.constant 0 : index
    %c0_10 = arith.constant 0 : index
    %17 = vector.load %arg4[%16, %c0_9, %c0_10] : memref<8x8x128xbf16, #tpu.memory_space<vmem>>, vector<1x8x128xbf16>
    %18 = vector.shape_cast %17 : vector<1x8x128xbf16> to vector<8x128xbf16>
    %19 = vector.shape_cast %15 : vector<8x128xbf16> to vector<1x8x128xbf16>
    tpu.vector_store %arg4[%16, %c0_9, %c0_10], %19 {strides = array<i32>} : memref<8x8x128xbf16, #tpu.memory_space<vmem>>, vector<1x8x128xbf16>,
    %c1_i32 = arith.constant 1 : i32
    %20 = arith.index_cast %c1_i32 : i32 to index
    %c0_11 = arith.constant 0 : index
    %c0_12 = arith.constant 0 : index
    %21 = vector.load %arg0[%20, %c0_11, %c0_12] : memref<8x8x128xbf16, #tpu.memory_space<vmem>>, vector<1x8x128xbf16>
    %22 = vector.shape_cast %21 : vector<1x8x128xbf16> to vector<8x128xbf16>
    %c0_13 = arith.constant 0 : index
    %c0_14 = arith.constant 0 : index
    %23 = vector.load %arg1[%c0_13, %c0_14] : memref<128x128xbf16, #tpu.memory_space<vmem>>, vector<128x128xbf16>
    %cst_15 = arith.constant dense<0.000000e+00> : vector<8x128xf32>
    %24 = tpu.matmul %22, %23, %cst_15 {dimension_numbers = #tpu.dot_dimension_numbers<[1], [0], [0], [1], [0, 0, 1, 1], [], []>} : vector<8x128xbf16>, vector<128x128xbf16>, vector<8x128xf32> -> vector<8x128xf32>
    %25 = arith.truncf %14 : vector<8x128xf32> to vector<8x128xbf16>
    %c0_16 = arith.constant 0 : index
    %c0_17 = arith.constant 0 : index
    %26 = vector.load %arg2[%c0_16, %c0_17] : memref<128x128xbf16, #tpu.memory_space<vmem>>, vector<128x128xbf16>
    %cst_18 = arith.constant dense<0.000000e+00> : vector<8x128xf32>
    %27 = tpu.matmul %25, %26, %cst_18 {dimension_numbers = #tpu.dot_dimension_numbers<[1], [0], [0], [1], [0, 0, 1, 1], [], []>} : vector<8x128xbf16>, vector<128x128xbf16>, vector<8x128xf32> -> vector<8x128xf32>
    %28 = arith.addf %24, %27 : vector<8x128xf32>
    %29 = arith.addf %28, %2 : vector<8x128xf32>
    %30 = math.tanh %29 : vector<8x128xf32>
    %31 = arith.truncf %30 : vector<8x128xf32> to vector<8x128xbf16>
    %32 = arith.index_cast %c1_i32 : i32 to index
    %c0_19 = arith.constant 0 : index
    %c0_20 = arith.constant 0 : index
    %33 = vector.load %arg4[%32, %c0_19, %c0_20] : memref<8x8x128xbf16, #tpu.memory_space<vmem>>, vector<1x8x128xbf16>
    %34 = vector.shape_cast %33 : vector<1x8x128xbf16> to vector<8x128xbf16>
    %35 = vector.shape_cast %31 : vector<8x128xbf16> to vector<1x8x128xbf16>
    tpu.vector_store %arg4[%32, %c0_19, %c0_20], %35 {strides = array<i32>} : memref<8x8x128xbf16, #tpu.memory_space<vmem>>, vector<1x8x128xbf16>,
    %c2_i32 = arith.constant 2 : i32
    %36 = arith.index_cast %c2_i32 : i32 to index
    %c0_21 = arith.constant 0 : index
    %c0_22 = arith.constant 0 : index
    %37 = vector.load %arg0[%36, %c0_21, %c0_22] : memref<8x8x128xbf16, #tpu.memory_space<vmem>>, vector<1x8x128xbf16>
    %38 = vector.shape_cast %37 : vector<1x8x128xbf16> to vector<8x128xbf16>
    %c0_23 = arith.constant 0 : index
    %c0_24 = arith.constant 0 : index
    %39 = vector.load %arg1[%c0_23, %c0_24] : memref<128x128xbf16, #tpu.memory_space<vmem>>, vector<128x128xbf16>
    %cst_25 = arith.constant dense<0.000000e+00> : vector<8x128xf32>
    %40 = tpu.matmul %38, %39, %cst_25 {dimension_numbers = #tpu.dot_dimension_numbers<[1], [0], [0], [1], [0, 0, 1, 1], [], []>} : vector<8x128xbf16>, vector<128x128xbf16>, vector<8x128xf32> -> vector<8x128xf32>
    %41 = arith.truncf %30 : vector<8x128xf32> to vector<8x128xbf16>
    %c0_26 = arith.constant 0 : index
    %c0_27 = arith.constant 0 : index
    %42 = vector.load %arg2[%c0_26, %c0_27] : memref<128x128xbf16, #tpu.memory_space<vmem>>, vector<128x128xbf16>
    %cst_28 = arith.constant dense<0.000000e+00> : vector<8x128xf32>
    %43 = tpu.matmul %41, %42, %cst_28 {dimension_numbers = #tpu.dot_dimension_numbers<[1], [0], [0], [1], [0, 0, 1, 1], [], []>} : vector<8x128xbf16>, vector<128x128xbf16>, vector<8x128xf32> -> vector<8x128xf32>
    %44 = arith.addf %40, %43 : vector<8x128xf32>
    %45 = arith.addf %44, %2 : vector<8x128xf32>
    %46 = math.tanh %45 : vector<8x128xf32>
    %47 = arith.truncf %46 : vector<8x128xf32> to vector<8x128xbf16>
    %48 = arith.index_cast %c2_i32 : i32 to index
    %c0_29 = arith.constant 0 : index
    %c0_30 = arith.constant 0 : index
    %49 = vector.load %arg4[%48, %c0_29, %c0_30] : memref<8x8x128xbf16, #tpu.memory_space<vmem>>, vector<1x8x128xbf16>
    %50 = vector.shape_cast %49 : vector<1x8x128xbf16> to vector<8x128xbf16>
    %51 = vector.shape_cast %47 : vector<8x128xbf16> to vector<1x8x128xbf16>
    tpu.vector_store %arg4[%48, %c0_29, %c0_30], %51 {strides = array<i32>} : memref<8x8x128xbf16, #tpu.memory_space<vmem>>, vector<1x8x128xbf16>,
    %c3_i32 = arith.constant 3 : i32
    %52 = arith.index_cast %c3_i32 : i32 to index
    %c0_31 = arith.constant 0 : index
    %c0_32 = arith.constant 0 : index
    %53 = vector.load %arg0[%52, %c0_31, %c0_32] : memref<8x8x128xbf16, #tpu.memory_space<vmem>>, vector<1x8x128xbf16>
    %54 = vector.shape_cast %53 : vector<1x8x128xbf16> to vector<8x128xbf16>
    %c0_33 = arith.constant 0 : index
    %c0_34 = arith.constant 0 : index
    %55 = vector.load %arg1[%c0_33, %c0_34] : memref<128x128xbf16, #tpu.memory_space<vmem>>, vector<128x128xbf16>
    %cst_35 = arith.constant dense<0.000000e+00> : vector<8x128xf32>
    %56 = tpu.matmul %54, %55, %cst_35 {dimension_numbers = #tpu.dot_dimension_numbers<[1], [0], [0], [1], [0, 0, 1, 1], [], []>} : vector<8x128xbf16>, vector<128x128xbf16>, vector<8x128xf32> -> vector<8x128xf32>
    %57 = arith.truncf %46 : vector<8x128xf32> to vector<8x128xbf16>
    %c0_36 = arith.constant 0 : index
    %c0_37 = arith.constant 0 : index
    %58 = vector.load %arg2[%c0_36, %c0_37] : memref<128x128xbf16, #tpu.memory_space<vmem>>, vector<128x128xbf16>
    %cst_38 = arith.constant dense<0.000000e+00> : vector<8x128xf32>
    %59 = tpu.matmul %57, %58, %cst_38 {dimension_numbers = #tpu.dot_dimension_numbers<[1], [0], [0], [1], [0, 0, 1, 1], [], []>} : vector<8x128xbf16>, vector<128x128xbf16>, vector<8x128xf32> -> vector<8x128xf32>
    %60 = arith.addf %56, %59 : vector<8x128xf32>
    %61 = arith.addf %60, %2 : vector<8x128xf32>
    %62 = math.tanh %61 : vector<8x128xf32>
    %63 = arith.truncf %62 : vector<8x128xf32> to vector<8x128xbf16>
    %64 = arith.index_cast %c3_i32 : i32 to index
    %c0_39 = arith.constant 0 : index
    %c0_40 = arith.constant 0 : index
    %65 = vector.load %arg4[%64, %c0_39, %c0_40] : memref<8x8x128xbf16, #tpu.memory_space<vmem>>, vector<1x8x128xbf16>
    %66 = vector.shape_cast %65 : vector<1x8x128xbf16> to vector<8x128xbf16>
    %67 = vector.shape_cast %63 : vector<8x128xbf16> to vector<1x8x128xbf16>
    tpu.vector_store %arg4[%64, %c0_39, %c0_40], %67 {strides = array<i32>} : memref<8x8x128xbf16, #tpu.memory_space<vmem>>, vector<1x8x128xbf16>,
    %c4_i32 = arith.constant 4 : i32
    %68 = arith.index_cast %c4_i32 : i32 to index
    %c0_41 = arith.constant 0 : index
    %c0_42 = arith.constant 0 : index
    %69 = vector.load %arg0[%68, %c0_41, %c0_42] : memref<8x8x128xbf16, #tpu.memory_space<vmem>>, vector<1x8x128xbf16>
    %70 = vector.shape_cast %69 : vector<1x8x128xbf16> to vector<8x128xbf16>
    %c0_43 = arith.constant 0 : index
    %c0_44 = arith.constant 0 : index
    %71 = vector.load %arg1[%c0_43, %c0_44] : memref<128x128xbf16, #tpu.memory_space<vmem>>, vector<128x128xbf16>
    %cst_45 = arith.constant dense<0.000000e+00> : vector<8x128xf32>
    %72 = tpu.matmul %70, %71, %cst_45 {dimension_numbers = #tpu.dot_dimension_numbers<[1], [0], [0], [1], [0, 0, 1, 1], [], []>} : vector<8x128xbf16>, vector<128x128xbf16>, vector<8x128xf32> -> vector<8x128xf32>
    %73 = arith.truncf %62 : vector<8x128xf32> to vector<8x128xbf16>
    %c0_46 = arith.constant 0 : index
    %c0_47 = arith.constant 0 : index
    %74 = vector.load %arg2[%c0_46, %c0_47] : memref<128x128xbf16, #tpu.memory_space<vmem>>, vector<128x128xbf16>
    %cst_48 = arith.constant dense<0.000000e+00> : vector<8x128xf32>
    %75 = tpu.matmul %73, %74, %cst_48 {dimension_numbers = #tpu.dot_dimension_numbers<[1], [0], [0], [1], [0, 0, 1, 1], [], []>} : vector<8x128xbf16>, vector<128x128xbf16>, vector<8x128xf32> -> vector<8x128xf32>
    %76 = arith.addf %72, %75 : vector<8x128xf32>
    %77 = arith.addf %76, %2 : vector<8x128xf32>
    %78 = math.tanh %77 : vector<8x128xf32>
    %79 = arith.truncf %78 : vector<8x128xf32> to vector<8x128xbf16>
    %80 = arith.index_cast %c4_i32 : i32 to index
    %c0_49 = arith.constant 0 : index
    %c0_50 = arith.constant 0 : index
    %81 = vector.load %arg4[%80, %c0_49, %c0_50] : memref<8x8x128xbf16, #tpu.memory_space<vmem>>, vector<1x8x128xbf16>
    %82 = vector.shape_cast %81 : vector<1x8x128xbf16> to vector<8x128xbf16>
    %83 = vector.shape_cast %79 : vector<8x128xbf16> to vector<1x8x128xbf16>
    tpu.vector_store %arg4[%80, %c0_49, %c0_50], %83 {strides = array<i32>} : memref<8x8x128xbf16, #tpu.memory_space<vmem>>, vector<1x8x128xbf16>,
    %c5_i32 = arith.constant 5 : i32
    %84 = arith.index_cast %c5_i32 : i32 to index
    %c0_51 = arith.constant 0 : index
    %c0_52 = arith.constant 0 : index
    %85 = vector.load %arg0[%84, %c0_51, %c0_52] : memref<8x8x128xbf16, #tpu.memory_space<vmem>>, vector<1x8x128xbf16>
    %86 = vector.shape_cast %85 : vector<1x8x128xbf16> to vector<8x128xbf16>
    %c0_53 = arith.constant 0 : index
    %c0_54 = arith.constant 0 : index
    %87 = vector.load %arg1[%c0_53, %c0_54] : memref<128x128xbf16, #tpu.memory_space<vmem>>, vector<128x128xbf16>
    %cst_55 = arith.constant dense<0.000000e+00> : vector<8x128xf32>
    %88 = tpu.matmul %86, %87, %cst_55 {dimension_numbers = #tpu.dot_dimension_numbers<[1], [0], [0], [1], [0, 0, 1, 1], [], []>} : vector<8x128xbf16>, vector<128x128xbf16>, vector<8x128xf32> -> vector<8x128xf32>
    %89 = arith.truncf %78 : vector<8x128xf32> to vector<8x128xbf16>
    %c0_56 = arith.constant 0 : index
    %c0_57 = arith.constant 0 : index
    %90 = vector.load %arg2[%c0_56, %c0_57] : memref<128x128xbf16, #tpu.memory_space<vmem>>, vector<128x128xbf16>
    %cst_58 = arith.constant dense<0.000000e+00> : vector<8x128xf32>
    %91 = tpu.matmul %89, %90, %cst_58 {dimension_numbers = #tpu.dot_dimension_numbers<[1], [0], [0], [1], [0, 0, 1, 1], [], []>} : vector<8x128xbf16>, vector<128x128xbf16>, vector<8x128xf32> -> vector<8x128xf32>
    %92 = arith.addf %88, %91 : vector<8x128xf32>
    %93 = arith.addf %92, %2 : vector<8x128xf32>
    %94 = math.tanh %93 : vector<8x128xf32>
    %95 = arith.truncf %94 : vector<8x128xf32> to vector<8x128xbf16>
    %96 = arith.index_cast %c5_i32 : i32 to index
    %c0_59 = arith.constant 0 : index
    %c0_60 = arith.constant 0 : index
    %97 = vector.load %arg4[%96, %c0_59, %c0_60] : memref<8x8x128xbf16, #tpu.memory_space<vmem>>, vector<1x8x128xbf16>
    %98 = vector.shape_cast %97 : vector<1x8x128xbf16> to vector<8x128xbf16>
    %99 = vector.shape_cast %95 : vector<8x128xbf16> to vector<1x8x128xbf16>
    tpu.vector_store %arg4[%96, %c0_59, %c0_60], %99 {strides = array<i32>} : memref<8x8x128xbf16, #tpu.memory_space<vmem>>, vector<1x8x128xbf16>,
    %c6_i32 = arith.constant 6 : i32
    %100 = arith.index_cast %c6_i32 : i32 to index
    %c0_61 = arith.constant 0 : index
    %c0_62 = arith.constant 0 : index
    %101 = vector.load %arg0[%100, %c0_61, %c0_62] : memref<8x8x128xbf16, #tpu.memory_space<vmem>>, vector<1x8x128xbf16>
    %102 = vector.shape_cast %101 : vector<1x8x128xbf16> to vector<8x128xbf16>
    %c0_63 = arith.constant 0 : index
    %c0_64 = arith.constant 0 : index
    %103 = vector.load %arg1[%c0_63, %c0_64] : memref<128x128xbf16, #tpu.memory_space<vmem>>, vector<128x128xbf16>
    %cst_65 = arith.constant dense<0.000000e+00> : vector<8x128xf32>
    %104 = tpu.matmul %102, %103, %cst_65 {dimension_numbers = #tpu.dot_dimension_numbers<[1], [0], [0], [1], [0, 0, 1, 1], [], []>} : vector<8x128xbf16>, vector<128x128xbf16>, vector<8x128xf32> -> vector<8x128xf32>
    %105 = arith.truncf %94 : vector<8x128xf32> to vector<8x128xbf16>
    %c0_66 = arith.constant 0 : index
    %c0_67 = arith.constant 0 : index
    %106 = vector.load %arg2[%c0_66, %c0_67] : memref<128x128xbf16, #tpu.memory_space<vmem>>, vector<128x128xbf16>
    %cst_68 = arith.constant dense<0.000000e+00> : vector<8x128xf32>
    %107 = tpu.matmul %105, %106, %cst_68 {dimension_numbers = #tpu.dot_dimension_numbers<[1], [0], [0], [1], [0, 0, 1, 1], [], []>} : vector<8x128xbf16>, vector<128x128xbf16>, vector<8x128xf32> -> vector<8x128xf32>
    %108 = arith.addf %104, %107 : vector<8x128xf32>
    %109 = arith.addf %108, %2 : vector<8x128xf32>
    %110 = math.tanh %109 : vector<8x128xf32>
    %111 = arith.truncf %110 : vector<8x128xf32> to vector<8x128xbf16>
    %112 = arith.index_cast %c6_i32 : i32 to index
    %c0_69 = arith.constant 0 : index
    %c0_70 = arith.constant 0 : index
    %113 = vector.load %arg4[%112, %c0_69, %c0_70] : memref<8x8x128xbf16, #tpu.memory_space<vmem>>, vector<1x8x128xbf16>
    %114 = vector.shape_cast %113 : vector<1x8x128xbf16> to vector<8x128xbf16>
    %115 = vector.shape_cast %111 : vector<8x128xbf16> to vector<1x8x128xbf16>
    tpu.vector_store %arg4[%112, %c0_69, %c0_70], %115 {strides = array<i32>} : memref<8x8x128xbf16, #tpu.memory_space<vmem>>, vector<1x8x128xbf16>,
    %c7_i32 = arith.constant 7 : i32
    %116 = arith.index_cast %c7_i32 : i32 to index
    %c0_71 = arith.constant 0 : index
    %c0_72 = arith.constant 0 : index
    %117 = vector.load %arg0[%116, %c0_71, %c0_72] : memref<8x8x128xbf16, #tpu.memory_space<vmem>>, vector<1x8x128xbf16>
    %118 = vector.shape_cast %117 : vector<1x8x128xbf16> to vector<8x128xbf16>
    %c0_73 = arith.constant 0 : index
    %c0_74 = arith.constant 0 : index
    %119 = vector.load %arg1[%c0_73, %c0_74] : memref<128x128xbf16, #tpu.memory_space<vmem>>, vector<128x128xbf16>
    %cst_75 = arith.constant dense<0.000000e+00> : vector<8x128xf32>
    %120 = tpu.matmul %118, %119, %cst_75 {dimension_numbers = #tpu.dot_dimension_numbers<[1], [0], [0], [1], [0, 0, 1, 1], [], []>} : vector<8x128xbf16>, vector<128x128xbf16>, vector<8x128xf32> -> vector<8x128xf32>
    %121 = arith.truncf %110 : vector<8x128xf32> to vector<8x128xbf16>
    %c0_76 = arith.constant 0 : index
    %c0_77 = arith.constant 0 : index
    %122 = vector.load %arg2[%c0_76, %c0_77] : memref<128x128xbf16, #tpu.memory_space<vmem>>, vector<128x128xbf16>
    %cst_78 = arith.constant dense<0.000000e+00> : vector<8x128xf32>
    %123 = tpu.matmul %121, %122, %cst_78 {dimension_numbers = #tpu.dot_dimension_numbers<[1], [0], [0], [1], [0, 0, 1, 1], [], []>} : vector<8x128xbf16>, vector<128x128xbf16>, vector<8x128xf32> -> vector<8x128xf32>
    %124 = arith.addf %120, %123 : vector<8x128xf32>
    %125 = arith.addf %124, %2 : vector<8x128xf32>
    %126 = math.tanh %125 : vector<8x128xf32>
    %127 = arith.truncf %126 : vector<8x128xf32> to vector<8x128xbf16>
    %128 = arith.index_cast %c7_i32 : i32 to index
    %c0_79 = arith.constant 0 : index
    %c0_80 = arith.constant 0 : index
    %129 = vector.load %arg4[%128, %c0_79, %c0_80] : memref<8x8x128xbf16, #tpu.memory_space<vmem>>, vector<1x8x128xbf16>
    %130 = vector.shape_cast %129 : vector<1x8x128xbf16> to vector<8x128xbf16>
    %131 = vector.shape_cast %127 : vector<8x128xbf16> to vector<1x8x128xbf16>
    tpu.vector_store %arg4[%128, %c0_79, %c0_80], %131 {strides = array<i32>} : memref<8x8x128xbf16, #tpu.memory_space<vmem>>, vector<1x8x128xbf16>,
    %c8_i32 = arith.constant 8 : i32
    return
  }
}

module attributes {stable_mosaic.version = 11 : i64} {
  func.func @proj_kernel(%arg0: i32, %arg1: i32, %arg2: memref<32x128xbf16, #tpu.memory_space<vmem>>, %arg3: memref<128x128xbf16, #tpu.memory_space<vmem>>, %arg4: memref<1x128xf32, #tpu.memory_space<vmem>>, %arg5: memref<32x128xf32, #tpu.memory_space<vmem>>) attributes {dimension_semantics = [#tpu.dimension_semantics<parallel>, #tpu.dimension_semantics<parallel>], iteration_bounds = array<i64: 1, 1>, scalar_prefetch = 0 : i64, scratch_operands = 0 : i64, tpu.core_type = #tpu.core_type<tc>, window_params = [{transform_indices = @transform_0, window_bounds = array<i64: 32, 128>}, {transform_indices = @transform_1, window_bounds = array<i64: 128, 128>}, {transform_indices = @transform_2, window_bounds = array<i64: 1, 128>}, {transform_indices = @transform_3, window_bounds = array<i64: 32, 128>}]} {
    %c0 = arith.constant 0 : index
    %c0_0 = arith.constant 0 : index
    %0 = vector.load %arg2[%c0, %c0_0] : memref<32x128xbf16, #tpu.memory_space<vmem>>, vector<32x128xbf16>
    %c0_1 = arith.constant 0 : index
    %c0_2 = arith.constant 0 : index
    %1 = vector.load %arg3[%c0_1, %c0_2] : memref<128x128xbf16, #tpu.memory_space<vmem>>, vector<128x128xbf16>
    %cst = arith.constant dense<0.000000e+00> : vector<32x128xf32>
    %2 = tpu.matmul %0, %1, %cst {dimension_numbers = #tpu.dot_dimension_numbers<[1], [0], [0], [1], [0, 0, 1, 1], [], []>} : vector<32x128xbf16>, vector<128x128xbf16>, vector<32x128xf32> -> vector<32x128xf32>
    %c0_3 = arith.constant 0 : index
    %c0_4 = arith.constant 0 : index
    %3 = vector.load %arg4[%c0_3, %c0_4] : memref<1x128xf32, #tpu.memory_space<vmem>>, vector<1x128xf32>
    %4 = vector.broadcast %3 : vector<1x128xf32> to vector<32x128xf32>
    %5 = arith.addf %2, %4 : vector<32x128xf32>
    %c0_5 = arith.constant 0 : index
    %c0_6 = arith.constant 0 : index
    %6 = vector.load %arg5[%c0_5, %c0_6] : memref<32x128xf32, #tpu.memory_space<vmem>>, vector<32x128xf32>
    tpu.vector_store %arg5[%c0_5, %c0_6], %5 {strides = array<i32>} : memref<32x128xf32, #tpu.memory_space<vmem>>, vector<32x128xf32>,
    return
  }
  func.func @transform_0(%arg0: i32, %arg1: i32) -> (i32, i32) {
    %c0_i32 = arith.constant 0 : i32
    %c0_i32_0 = arith.constant 0 : i32
    return %arg0, %c0_i32 : i32, i32
  }
  func.func @transform_1(%arg0: i32, %arg1: i32) -> (i32, i32) {
    %c0_i32 = arith.constant 0 : i32
    %c0_i32_0 = arith.constant 0 : i32
    return %c0_i32, %arg1 : i32, i32
  }
  func.func @transform_2(%arg0: i32, %arg1: i32) -> (i32, i32) {
    %c0_i32 = arith.constant 0 : i32
    %c0_i32_0 = arith.constant 0 : i32
    return %c0_i32, %arg1 : i32, i32
  }
  func.func @transform_3(%arg0: i32, %arg1: i32) -> (i32, i32) {
    %c0_i32 = arith.constant 0 : i32
    return %arg0, %arg1 : i32, i32
  }
}

</mosaic_0001>

<bundles_post_ra>
// kernel: decoder_vanilla_forward.3
= control target key start
LH: loop header
LB: loop body
LE: loop exit
PB: predicated region body
PF: predicated region fallthrough
CT: control target
= control target key end

     0   :  { %s249_s1 = inlined_call_operand.vmem [shape: bf16[128,128], index: 1, kind: input, shape index: {}]   ;;  %s250_s2 = inlined_call_operand.vmem [shape: f32[1,128], index: 2, kind: input, shape index: {}]   ;;  %s251_s0 = inlined_call_operand.vmem [shape: bf16[32,128], index: 0, kind: input, shape index: {}]   ;;  %s252_s3 = inlined_call_operand.vmem [shape: f32[32,128], index: 3, kind: output, shape index: {}]  }
   0x1   :  { %v174_v0 = vld [vmem:[%s249_s1 + $0x38] sm:$0xff]  ;;  %v173_v1 = vld [vmem:[%s249_s1 + $0x30] sm:$0xff]  ;;  %v172_v2 = vld [vmem:[%s249_s1 + $0x28] sm:$0xff] }
   0x2   :  { %98 = vmatpush.bf16.msra.mxu0 %v174_v0  ;;  %175 = vmatpush.bf16.msra.mxu1 %v174_v0  ;;  %v171_v3 = vld [vmem:[%s249_s1 + $0x20] sm:$0xff]  ;;  %v170_v4 = vld [vmem:[%s249_s1 + $0x18] sm:$0xff]  ;;  %v169_v5 = vld [vmem:[%s249_s1 + $0x10] sm:$0xff] }
   0x3   :  { %v168_v6 = vld [vmem:[%s249_s1 + $0x8] sm:$0xff]  ;;  %v167_v7 = vld [vmem:[%s249_s1] sm:$0xff] }
   0x4   :  { %v165_v8 = vld [vmem:[%s251_s0] sm:$0xff]  ;;  %v166_v9 = vld [vmem:[%s251_s0 + $0x8] sm:$0xff] }
   0x5   :  { %v183_v10 = vld [vmem:[%s250_s2] ss:$0 sm:$0xff] }
   0x6   :  { %99 = vmatpush.bf16.msra.mxu0 %v173_v1  ;;  %176 = vmatpush.bf16.msra.mxu1 %v173_v1 }
   0xa   :  { %100 = vmatpush.bf16.msra.mxu0 %v172_v2  ;;  %177 = vmatpush.bf16.msra.mxu1 %v172_v2 }
   0xe   :  { %101 = vmatpush.bf16.msra.mxu0 %v171_v3  ;;  %178 = vmatpush.bf16.msra.mxu1 %v171_v3 }
  0x12   :  { %102 = vmatpush.bf16.msra.mxu0 %v170_v4  ;;  %179 = vmatpush.bf16.msra.mxu1 %v170_v4 }
  0x16   :  { %103 = vmatpush.bf16.msra.mxu0 %v169_v5  ;;  %180 = vmatpush.bf16.msra.mxu1 %v169_v5 }
  0x1a   :  { %104 = vmatpush.bf16.msra.mxu0 %v168_v6  ;;  %181 = vmatpush.bf16.msra.mxu1 %v168_v6 }
  0x1e   :  { %105 = vmatpush.bf16.msra.mxu0 %v167_v7  ;;  %182 = vmatpush.bf16.msra.mxu1 %v167_v7 }
  0x21   :  { %106 = vmatmul.bf16.vlgmr.msra.gmra.mxu0 %v165_v8  ;;  %111 = vmatmul.bf16.vlgmr.msra.gmra.mxu1 %v166_v9 }
  0x9e   :  { %v107_v11 = vpop.f32.mrf.mxu0  ;;  %v112_v12 = vpop.f32.mrf.mxu1 }
  0x9f   :  { %v108_v13 = vadd.f32 %v183_v10, %v107_v11  ;;  %v113_v14 = vadd.f32 %v183_v10, %v112_v12 }
  0xa1   :  { %117 = vst [vmem:[%s252_s3] sm:$0xff] %v108_v13 }
  0xa2   :  { %119 = vst [vmem:[%s252_s3 + $0x10] sm:$0xff] %v113_v14 }
  0xa6   :  { %v109_v15 = vpop.f32.mrf.mxu0  ;;  %v114_v16 = vpop.f32.mrf.mxu1 }
  0xa7   :  { %v110_v17 = vadd.f32 %v183_v10, %v109_v15  ;;  %v115_v18 = vadd.f32 %v183_v10, %v114_v16 }
  0xa9   :  { %118 = vst [vmem:[%s252_s3 + $0x8] sm:$0xff] %v110_v17 }
  0xaa   :  { %120 = vst [vmem:[%s252_s3 + $0x18] sm:$0xff] %v115_v18 }

// kernel: decoder_vanilla_forward.2
= control target key start
LH: loop header
LB: loop body
LE: loop exit
PB: predicated region body
PF: predicated region fallthrough
CT: control target
= control target key end

     0   :  { %v1984_v29 = vmov 0   ;;  %s2455_s2 = inlined_call_operand.vmem [shape: bf16[128,128], index: 2, kind: input, shape index: {}]   ;;  %s2456_s1 = inlined_call_operand.vmem [shape: bf16[128,128], index: 1, kind: input, shape index: {}]   ;;  %s2457_s0 = inlined_call_operand.vmem [shape: bf16[8,8,128], index: 0, kind: input, shape index: {}]   ;;  %s2458_s3 = inlined_call_operand.vmem [shape: f32[1,128], index: 3, kind: input, shape index: {}]   ;;  %s2459_s4 = inlined_call_operand.vmem [shape: bf16[8,8,128], index: 4, kind: output, shape index: {}]  }
   0x1   :  { %v1853_v0 = vld [vmem:[%s2455_s2 + $0x38] sm:$0xff]  ;;  %v1852_v2 = vld [vmem:[%s2455_s2 + $0x30] sm:$0xff]  ;;  %v1851_v5 = vld [vmem:[%s2455_s2 + $0x28] sm:$0xff] }
   0x2   :  { %v1845_v1 = vld [vmem:[%s2456_s1 + $0x38] sm:$0xff]  ;;  %103 = vmatpush.bf16.msra.mxu0 %v1853_v0  ;;  %v1844_v3 = vld [vmem:[%s2456_s1 + $0x30] sm:$0xff]  ;;  %v1843_v6 = vld [vmem:[%s2456_s1 + $0x28] sm:$0xff] }
   0x3   :  { %164 = vmatpush.bf16.msra.mxu1 %v1845_v1  ;;  %v1861_v4 = vld [vmem:[%s2456_s1 + $0x38] sm:$0xff]  ;;  %v1860_v8 = vld [vmem:[%s2456_s1 + $0x30] sm:$0xff]  ;;  %v1850_v10 = vld [vmem:[%s2455_s2 + $0x20] sm:$0xff] }
   0x4   :  { %v1869_v7 = vld [vmem:[%s2455_s2 + $0x38] sm:$0xff]  ;;  %324 = vmatpush.bf16.msra.mxu3 %v1861_v4  ;;  %v1868_v9 = vld [vmem:[%s2455_s2 + $0x30] sm:$0xff]  ;;  %v1842_v11 = vld [vmem:[%s2456_s1 + $0x20] sm:$0xff] }
   0x5   :  { %263 = vmatpush.bf16.msra.mxu2 %v1869_v7  ;;  %v1859_v12 = vld [vmem:[%s2456_s1 + $0x28] sm:$0xff]  ;;  %v1849_v14 = vld [vmem:[%s2455_s2 + $0x18] sm:$0xff]  ;;  %v1858_v16 = vld [vmem:[%s2456_s1 + $0x20] sm:$0xff] }
   0x6   :  { %104 = vmatpush.bf16.msra.mxu0 %v1852_v2  ;;  %v1867_v13 = vld [vmem:[%s2455_s2 + $0x28] sm:$0xff]  ;;  %v1841_v15 = vld [vmem:[%s2456_s1 + $0x18] sm:$0xff]  ;;  %v1866_v17 = vld [vmem:[%s2455_s2 + $0x20] sm:$0xff] }
   0x7   :  { %165 = vmatpush.bf16.msra.mxu1 %v1844_v3  ;;  %v1848_v18 = vld [vmem:[%s2455_s2 + $0x10] sm:$0xff]  ;;  %v1857_v20 = vld [vmem:[%s2456_s1 + $0x18] sm:$0xff]  ;;  %v1847_v22 = vld [vmem:[%s2455_s2 + $0x8] sm:$0xff] }
   0x8   :  { %325 = vmatpush.bf16.msra.mxu3 %v1860_v8  ;;  %v1840_v19 = vld [vmem:[%s2456_s1 + $0x10] sm:$0xff]  ;;  %v1865_v21 = vld [vmem:[%s2455_s2 + $0x18] sm:$0xff]  ;;  %v1839_v23 = vld [vmem:[%s2456_s1 + $0x8] sm:$0xff] }
   0x9   :  { %264 = vmatpush.bf16.msra.mxu2 %v1868_v9  ;;  %v1856_v24 = vld [vmem:[%s2456_s1 + $0x10] sm:$0xff]  ;;  %v1846_v25 = vld [vmem:[%s2455_s2] sm:$0xff]  ;;  %v1855_v27 = vld [vmem:[%s2456_s1 + $0x8] sm:$0xff] }
   0xa   :  { %105 = vmatpush.bf16.msra.mxu0 %v1851_v5  ;;  %v1838_v26 = vld [vmem:[%s2456_s1] sm:$0xff]  ;;  %v1864_v30 = vld [vmem:[%s2455_s2 + $0x10] sm:$0xff]  ;;  %v1863_v33 = vld [vmem:[%s2455_s2 + $0x8] sm:$0xff] }
   0xb   :  { %166 = vmatpush.bf16.msra.mxu1 %v1843_v6  ;;  %v22_v28 = vld [vmem:[%s2457_s0] sm:$0xf]  ;;  %v1376_v32 = vld [vmem:[%s2457_s0 + $0x4] sm:$0xf]  ;;  %v1877_v35 = vld [vmem:[%s2456_s1 + $0x38] sm:$0xff] }
   0xc   :  { %326 = vmatpush.bf16.msra.mxu3 %v1859_v12  ;;  %v1854_v31 = vld [vmem:[%s2456_s1] sm:$0xff]  ;;  %v1885_v36 = vld [vmem:[%s2455_s2 + $0x38] sm:$0xff]  ;;  %v1876_v37 = vld [vmem:[%s2456_s1 + $0x30] sm:$0xff] }
   0xd   :  { %265 = vmatpush.bf16.msra.mxu2 %v1867_v13  ;;  %v1862_v34 = vld [vmem:[%s2455_s2] sm:$0xff]  ;;  %v1884_v38 = vld [vmem:[%s2455_s2 + $0x30] sm:$0xff]  ;;  %v1875_v39 = vld [vmem:[%s2456_s1 + $0x28] sm:$0xff] }
   0xe   :  { %106 = vmatpush.bf16.msra.mxu0 %v1850_v10  ;;  %v1883_v40 = vld [vmem:[%s2455_s2 + $0x28] sm:$0xff]  ;;  %v1874_v41 = vld [vmem:[%s2456_s1 + $0x20] sm:$0xff]  ;;  %v1873_v42 = vld [vmem:[%s2456_s1 + $0x18] sm:$0xff] }
   0xf   :  { %167 = vmatpush.bf16.msra.mxu1 %v1842_v11  ;;  %v2139_v43 = vld [vmem:[%s2458_s3] ss:$0 sm:$0xff]  ;;  %v1872_v53 = vld [vmem:[%s2456_s1 + $0x10] sm:$0xff]  ;;  %v1881_v54 = vld [vmem:[%s2455_s2 + $0x18] sm:$0xff] }
  0x10   :  { %327 = vmatpush.bf16.msra.mxu3 %v1858_v16  ;;  %v1882_v52 = vld [vmem:[%s2455_s2 + $0x20] sm:$0xff]  ;;  %v1871_v55 = vld [vmem:[%s2456_s1 + $0x8] sm:$0xff]  ;;  %v1880_v58 = vld [vmem:[%s2455_s2 + $0x10] sm:$0xff] }
  0x11   :  { %266 = vmatpush.bf16.msra.mxu2 %v1866_v17  ;;  %v1870_v59 = vld [vmem:[%s2456_s1] sm:$0xff]  ;;  %v1442_v60 = vld [vmem:[%s2457_s0 + $0x8] sm:$0xf]  ;;  %v1893_v63 = vld [vmem:[%s2456_s1 + $0x38] sm:$0xff] }
  0x12   :  { %107 = vmatpush.bf16.msra.mxu0 %v1849_v14  ;;  %v1879_v61 = vld [vmem:[%s2455_s2 + $0x8] sm:$0xff]  ;;  %v1878_v62 = vld [vmem:[%s2455_s2] sm:$0xff]  ;;  %v1901_v0 = vld [vmem:[%s2455_s2 + $0x38] sm:$0xff] }
  0x13   :  { %168 = vmatpush.bf16.msra.mxu1 %v1841_v15  ;;  %v1892_v1 = vld [vmem:[%s2456_s1 + $0x30] sm:$0xff]  ;;  %v1891_v3 = vld [vmem:[%s2456_s1 + $0x28] sm:$0xff]  ;;  %v1890_v5 = vld [vmem:[%s2456_s1 + $0x20] sm:$0xff] }
  0x14   :  { %328 = vmatpush.bf16.msra.mxu3 %v1857_v20  ;;  %v1900_v2 = vld [vmem:[%s2455_s2 + $0x30] sm:$0xff]  ;;  %v1899_v4 = vld [vmem:[%s2455_s2 + $0x28] sm:$0xff]  ;;  %v1889_v6 = vld [vmem:[%s2456_s1 + $0x18] sm:$0xff] }
  0x15   :  { %267 = vmatpush.bf16.msra.mxu2 %v1865_v21  ;;  %v1898_v13 = vld [vmem:[%s2455_s2 + $0x20] sm:$0xff]  ;;  %v1888_v14 = vld [vmem:[%s2456_s1 + $0x10] sm:$0xff]  ;;  %v1897_v15 = vld [vmem:[%s2455_s2 + $0x18] sm:$0xff] }
  0x16   :  { %108 = vmatpush.bf16.msra.mxu0 %v1848_v18  ;;  %v1887_v16 = vld [vmem:[%s2456_s1 + $0x8] sm:$0xff]  ;;  %v1886_v20 = vld [vmem:[%s2456_s1] sm:$0xff] }
  0x17   :  { %169 = vmatpush.bf16.msra.mxu1 %v1840_v19  ;;  %v1896_v19 = vld [vmem:[%s2455_s2 + $0x10] sm:$0xff]  ;;  %v1508_v21 = vld [vmem:[%s2457_s0 + $0xc] sm:$0xf] }
  0x18   :  { %329 = vmatpush.bf16.msra.mxu3 %v1856_v24  ;;  %v1909_v24 = vld [vmem:[%s2456_s1 + $0x38] sm:$0xff] }
  0x19   :  { %268 = vmatpush.bf16.msra.mxu2 %v1864_v30  ;;  %v1906_v30 = vld [vmem:[%s2456_s1 + $0x20] sm:$0xff] }
  0x1a   :  { %109 = vmatpush.bf16.msra.mxu0 %v1847_v22  ;;  %v1895_v22 = vld [vmem:[%s2455_s2 + $0x8] sm:$0xff] }
  0x1b   :  { %170 = vmatpush.bf16.msra.mxu1 %v1839_v23  ;;  %v1894_v23 = vld [vmem:[%s2455_s2] sm:$0xff] }
  0x1c   :  { %330 = vmatpush.bf16.msra.mxu3 %v1855_v27  ;;  %v1916_v27 = vld [vmem:[%s2455_s2 + $0x30] sm:$0xff] }
  0x1d   :  { %269 = vmatpush.bf16.msra.mxu2 %v1863_v33 }
  0x1e   :  { %110 = vmatpush.bf16.msra.mxu0 %v1846_v25  ;;  %v1917_v25 = vld [vmem:[%s2455_s2 + $0x38] sm:$0xff] }
  0x1f   :  { %171 = vmatpush.bf16.msra.mxu1 %v1838_v26  ;;  %v1908_v26 = vld [vmem:[%s2456_s1 + $0x30] sm:$0xff] }
  0x20   :  { %331 = vmatpush.bf16.msra.mxu3 %v1854_v31  ;;  %v1905_v31 = vld [vmem:[%s2456_s1 + $0x18] sm:$0xff] }
  0x21   :  { %111 = vmatmul.bf16.vlgmr.msra.gmra.mxu0 %v1984_v29  ;;  %270 = vmatpush.bf16.msra.mxu2 %v1862_v34  ;;  %v1915_v29 = vld [vmem:[%s2455_s2 + $0x28] sm:$0xff] }
  0x22   :  { %172 = vmatmul.bf16.vlgmr.msra.gmra.mxu1 %v22_v28  ;;  %424 = vmatpush.bf16.msrb.mxu0 %v1885_v36  ;;  %v1907_v28 = vld [vmem:[%s2456_s1 + $0x28] sm:$0xff] }
  0x23   :  { %332 = vmatmul.bf16.vlgmr.msra.gmra.mxu3 %v1376_v32  ;;  %485 = vmatpush.bf16.msrb.mxu1 %v1877_v35 }
  0x24   :  { %646 = vmatpush.bf16.msrb.mxu3 %v1893_v63 }
  0x25   :  { %585 = vmatpush.bf16.msrb.mxu2 %v1901_v0  ;;  %v1930_v0 = vld [vmem:[%s2455_s2 + $0x20] sm:$0xff] }
  0x26   :  { %425 = vmatpush.bf16.msrb.mxu0 %v1884_v38  ;;  %v1914_v38 = vld [vmem:[%s2455_s2 + $0x20] sm:$0xff] }
  0x27   :  { %486 = vmatpush.bf16.msrb.mxu1 %v1876_v37 }
  0x28   :  { %647 = vmatpush.bf16.msrb.mxu3 %v1892_v1  ;;  %v1920_v1 = vld [vmem:[%s2456_s1 + $0x10] sm:$0xff] }
  0x29   :  { %586 = vmatpush.bf16.msrb.mxu2 %v1900_v2  ;;  %v1929_v2 = vld [vmem:[%s2455_s2 + $0x18] sm:$0xff] }
  0x2a   :  { %426 = vmatpush.bf16.msrb.mxu0 %v1883_v40  ;;  %v1913_v40 = vld [vmem:[%s2455_s2 + $0x18] sm:$0xff] }
  0x2b   :  { %487 = vmatpush.bf16.msrb.mxu1 %v1875_v39  ;;  %v1904_v39 = vld [vmem:[%s2456_s1 + $0x10] sm:$0xff] }
  0x2c   :  { %648 = vmatpush.bf16.msrb.mxu3 %v1891_v3  ;;  %v1919_v3 = vld [vmem:[%s2456_s1 + $0x8] sm:$0xff] }
  0x2d   :  { %587 = vmatpush.bf16.msrb.mxu2 %v1899_v4 }
  0x2e   :  { %427 = vmatpush.bf16.msrb.mxu0 %v1882_v52  ;;  %v1924_v52 = vld [vmem:[%s2456_s1 + $0x30] sm:$0xff] }
  0x2f   :  { %488 = vmatpush.bf16.msrb.mxu1 %v1874_v41  ;;  %v1903_v41 = vld [vmem:[%s2456_s1 + $0x8] sm:$0xff] }
  0x30   :  { %649 = vmatpush.bf16.msrb.mxu3 %v1890_v5 }
  0x31   :  { %588 = vmatpush.bf16.msrb.mxu2 %v1898_v13  ;;  %v1940_v13 = vld [vmem:[%s2456_s1 + $0x30] sm:$0xff] }
  0x32   :  { %428 = vmatpush.bf16.msrb.mxu0 %v1881_v54  ;;  %v1923_v54 = vld [vmem:[%s2456_s1 + $0x28] sm:$0xff] }
  0x33   :  { %489 = vmatpush.bf16.msrb.mxu1 %v1873_v42 }
  0x34   :  { %650 = vmatpush.bf16.msrb.mxu3 %v1889_v6  ;;  %v1928_v6 = vld [vmem:[%s2455_s2 + $0x10] sm:$0xff] }
  0x35   :  { %589 = vmatpush.bf16.msrb.mxu2 %v1897_v15  ;;  %v1939_v15 = vld [vmem:[%s2456_s1 + $0x28] sm:$0xff] }
  0x36   :  { %429 = vmatpush.bf16.msrb.mxu0 %v1880_v58 }
  0x37   :  { %490 = vmatpush.bf16.msrb.mxu1 %v1872_v53  ;;  %v1932_v53 = vld [vmem:[%s2455_s2 + $0x30] sm:$0xff] }
  0x38   :  { %651 = vmatpush.bf16.msrb.mxu3 %v1888_v14  ;;  %v1948_v14 = vld [vmem:[%s2455_s2 + $0x30] sm:$0xff] }
  0x39   :  { %590 = vmatpush.bf16.msrb.mxu2 %v1896_v19 }
  0x3a   :  { %430 = vmatpush.bf16.msrb.mxu0 %v1879_v61 }
  0x3b   :  { %491 = vmatpush.bf16.msrb.mxu1 %v1871_v55  ;;  %v1931_v55 = vld [vmem:[%s2455_s2 + $0x28] sm:$0xff] }
  0x3c   :  { %652 = vmatpush.bf16.msrb.mxu3 %v1887_v16  ;;  %v1947_v16 = vld [vmem:[%s2455_s2 + $0x28] sm:$0xff] }
  0x3d   :  { %591 = vmatpush.bf16.msrb.mxu2 %v1895_v22 }
  0x3e   :  { %431 = vmatpush.bf16.msrb.mxu0 %v1878_v62 }
  0x3f   :  { %492 = vmatpush.bf16.msrb.mxu1 %v1870_v59 }
  0x40   :  { %653 = vmatpush.bf16.msrb.mxu3 %v1886_v20 }
  0x41   :  { %592 = vmatpush.bf16.msrb.mxu2 %v1894_v23 }
  0x42   :  { %493 = vmatmul.bf16.vlgmr.msrb.gmra.mxu1 %v1442_v60  ;;  %746 = vmatpush.bf16.msra.mxu0 %v1917_v25  ;;  %v1946_v25 = vld [vmem:[%s2455_s2 + $0x20] sm:$0xff] }
  0x43   :  { %654 = vmatmul.bf16.vlgmr.msrb.gmra.mxu3 %v1508_v21  ;;  %807 = vmatpush.bf16.msra.mxu1 %v1909_v24 }
  0x46   :  { %747 = vmatpush.bf16.msra.mxu0 %v1916_v27  ;;  %v1945_v27 = vld [vmem:[%s2455_s2 + $0x18] sm:$0xff] }
  0x47   :  { %808 = vmatpush.bf16.msra.mxu1 %v1908_v26  ;;  %v1936_v26 = vld [vmem:[%s2456_s1 + $0x10] sm:$0xff] }
  0x4a   :  { %748 = vmatpush.bf16.msra.mxu0 %v1915_v29 }
  0x4b   :  { %809 = vmatpush.bf16.msra.mxu1 %v1907_v28  ;;  %v1935_v28 = vld [vmem:[%s2456_s1 + $0x8] sm:$0xff] }
  0x4e   :  { %749 = vmatpush.bf16.msra.mxu0 %v1914_v38  ;;  %v1956_v38 = vld [vmem:[%s2456_s1 + $0x30] sm:$0xff] }
  0x4f   :  { %810 = vmatpush.bf16.msra.mxu1 %v1906_v30 }
  0x52   :  { %750 = vmatpush.bf16.msra.mxu0 %v1913_v40  ;;  %v1955_v40 = vld [vmem:[%s2456_s1 + $0x28] sm:$0xff] }
  0x53   :  { %811 = vmatpush.bf16.msra.mxu1 %v1905_v31  ;;  %v1944_v31 = vld [vmem:[%s2455_s2 + $0x10] sm:$0xff] }
  0x57   :  { %812 = vmatpush.bf16.msra.mxu1 %v1904_v39  ;;  %v1964_v39 = vld [vmem:[%s2455_s2 + $0x30] sm:$0xff] }
  0x5b   :  { %813 = vmatpush.bf16.msra.mxu1 %v1903_v41  ;;  %v1963_v41 = vld [vmem:[%s2455_s2 + $0x28] sm:$0xff] }
  0x9e   :  { %v112_v44 = vpop.f32.mrf.mxu0 }
  0x9f   :  { %v173_v45 = vpop.f32.mrf.mxu1 }
  0xa0   :  { %v174_v46 = vadd.f32 %v173_v45, %v112_v44  ;;  %v1912_v45 = vld [vmem:[%s2455_s2 + $0x10] sm:$0xff] }
  0xa1   :  { %751 = vmatpush.bf16.msra.mxu0 %v1912_v45 }
  0xa2   :  { %v177_v47 = vadd.f32 %v2139_v43, %v174_v46  ;;  %v1902_v46 = vld [vmem:[%s2456_s1] sm:$0xff] }
  0xa3   :  { %814 = vmatpush.bf16.msra.mxu1 %v1902_v46 }
  0xa4   :  { %1968 = vtanh.f32 %v177_v47  ;;  %v1574_v47 = vld [vmem:[%s2457_s0 + $0x10] sm:$0xf] }
  0xa6   :  { %v114_v48 = vpop.f32.mrf.mxu0  ;;  %v333_v56 = vpop.f32.mrf.mxu3  ;;  %815 = vmatmul.bf16.vlgmr.msra.gmra.mxu1 %v1574_v47 }
  0xa7   :  { %v175_v49 = vpop.f32.mrf.mxu1  ;;  %v1911_v48 = vld [vmem:[%s2455_s2 + $0x8] sm:$0xff] }
  0xa8   :  { %752 = vmatpush.bf16.msra.mxu0 %v1911_v48  ;;  %v1910_v49 = vld [vmem:[%s2455_s2] sm:$0xff] }
  0xaa   :  { %v1969_v50 = vpop.eup %1968 }
  0xab   :  { %v179_v51 = vpack.c.bf16 %v1969_v50, %v1969_v50  ;;  %v1925_v50 = vld [vmem:[%s2456_s1 + $0x38] sm:$0xff] }
  0xac   :  { %753 = vmatpush.bf16.msra.mxu0 %v1910_v49  ;;  %968 = vmatpush.bf16.msra.mxu3 %v1925_v50 }
  0xad   :  { %180 = vst [vmem:[%s2459_s4] sm:$0xf] %v179_v51  ;;  %271 = vmatmul.bf16.vlgmr.msra.gmra.mxu2 %v179_v51  ;;  %v1933_v51 = vld [vmem:[%s2455_s2 + $0x38] sm:$0xff] }
  0xae   :  { %v335_v57 = vpop.f32.mrf.mxu3  ;;  %907 = vmatpush.bf16.msra.mxu2 %v1933_v51  ;;  %v1962_v51 = vld [vmem:[%s2455_s2 + $0x20] sm:$0xff] }
  0xaf   :  { %v1921_v57 = vld [vmem:[%s2456_s1 + $0x18] sm:$0xff] }
  0xb0   :  { %969 = vmatpush.bf16.msra.mxu3 %v1924_v52  ;;  %v1952_v52 = vld [vmem:[%s2456_s1 + $0x10] sm:$0xff] }
  0xb2   :  { %908 = vmatpush.bf16.msra.mxu2 %v1932_v53  ;;  %v1961_v53 = vld [vmem:[%s2455_s2 + $0x18] sm:$0xff] }
  0xb4   :  { %970 = vmatpush.bf16.msra.mxu3 %v1923_v54  ;;  %v1951_v54 = vld [vmem:[%s2456_s1 + $0x8] sm:$0xff] }
  0xb6   :  { %909 = vmatpush.bf16.msra.mxu2 %v1931_v55 }
  0xba   :  { %910 = vmatpush.bf16.msra.mxu2 %v1930_v0 }
  0xbe   :  { %911 = vmatpush.bf16.msra.mxu2 %v1929_v2 }
  0xbf   :  { %v494_v17 = vpop.f32.mrf.mxu1 }
  0xc2   :  { %912 = vmatpush.bf16.msra.mxu2 %v1928_v6 }
  0xc6   :  { %v655_v42 = vpop.f32.mrf.mxu3 }
  0xc7   :  { %v496_v18 = vpop.f32.mrf.mxu1 }
  0xc8   :  { %v1937_v18 = vld [vmem:[%s2456_s1 + $0x18] sm:$0xff] }
  0xce   :  { %v657_v44 = vpop.f32.mrf.mxu3 }
  0xcf   :  { %v1953_v44 = vld [vmem:[%s2456_s1 + $0x18] sm:$0xff] }
 0x123   :  { %v816_v4 = vpop.f32.mrf.mxu1 }
 0x12b   :  { %v818_v5 = vpop.f32.mrf.mxu1 }
 0x130   :  { %v272_v7 = vpop.f32.mrf.mxu2 }
 0x131   :  { %v334_v8 = vadd.f32 %v333_v56, %v272_v7  ;;  %v1922_v56 = vld [vmem:[%s2456_s1 + $0x20] sm:$0xff] }
 0x132   :  { %971 = vmatpush.bf16.msra.mxu3 %v1922_v56  ;;  %v1918_v7 = vld [vmem:[%s2456_s1] sm:$0xff] }
 0x133   :  { %v337_v9 = vadd.f32 %v2139_v43, %v334_v8  ;;  %v1640_v8 = vld [vmem:[%s2457_s0 + $0x14] sm:$0xf] }
 0x135   :  { %1970 = vtanh.f32 %v337_v9  ;;  %v1927_v9 = vld [vmem:[%s2455_s2 + $0x8] sm:$0xff] }
 0x136   :  { %972 = vmatpush.bf16.msra.mxu3 %v1921_v57  ;;  %913 = vmatpush.bf16.msra.mxu2 %v1927_v9  ;;  %v1960_v57 = vld [vmem:[%s2455_s2 + $0x10] sm:$0xff] }
 0x138   :  { %v274_v10 = vpop.f32.mrf.mxu2 }
 0x139   :  { %v1926_v10 = vld [vmem:[%s2455_s2] sm:$0xff] }
 0x13a   :  { %973 = vmatpush.bf16.msra.mxu3 %v1920_v1  ;;  %914 = vmatpush.bf16.msra.mxu2 %v1926_v10 }
 0x13b   :  { %v1971_v11 = vpop.eup %1970 }
 0x13c   :  { %v339_v12 = vpack.c.bf16 %v1971_v11, %v1971_v11  ;;  %v1941_v11 = vld [vmem:[%s2456_s1 + $0x38] sm:$0xff] }
 0x13d   :  { %1129 = vmatpush.bf16.msrb.mxu1 %v1941_v11 }
 0x13e   :  { %1441 = vst [vmem:[%s2459_s4 + $0x4] sm:$0xf] %v339_v12  ;;  %432 = vmatmul.bf16.vlgmr.msrb.gmra.mxu0 %v339_v12  ;;  %974 = vmatpush.bf16.msra.mxu3 %v1919_v3  ;;  %v1949_v12 = vld [vmem:[%s2455_s2 + $0x38] sm:$0xff] }
 0x13f   :  { %1068 = vmatpush.bf16.msrb.mxu0 %v1949_v12 }
 0x141   :  { %1130 = vmatpush.bf16.msrb.mxu1 %v1940_v13 }
 0x142   :  { %975 = vmatpush.bf16.msra.mxu3 %v1918_v7 }
 0x143   :  { %1069 = vmatpush.bf16.msrb.mxu0 %v1948_v14 }
 0x145   :  { %976 = vmatmul.bf16.vlgmr.msra.gmra.mxu3 %v1640_v8  ;;  %1131 = vmatpush.bf16.msrb.mxu1 %v1939_v15 }
 0x147   :  { %1070 = vmatpush.bf16.msrb.mxu0 %v1947_v16 }
 0x14b   :  { %1071 = vmatpush.bf16.msrb.mxu0 %v1946_v25 }
 0x14f   :  { %1072 = vmatpush.bf16.msrb.mxu0 %v1945_v27 }
 0x153   :  { %1073 = vmatpush.bf16.msrb.mxu0 %v1944_v31 }
 0x1bb   :  { %v433_v32 = vpop.f32.mrf.mxu0 }
 0x1bc   :  { %v495_v33 = vadd.f32 %v494_v17, %v433_v32  ;;  %v1938_v17 = vld [vmem:[%s2456_s1 + $0x20] sm:$0xff] }
 0x1bd   :  { %1132 = vmatpush.bf16.msrb.mxu1 %v1938_v17  ;;  %v1934_v32 = vld [vmem:[%s2456_s1] sm:$0xff] }
 0x1be   :  { %v498_v34 = vadd.f32 %v2139_v43, %v495_v33  ;;  %v1706_v33 = vld [vmem:[%s2457_s0 + $0x18] sm:$0xf] }
 0x1c0   :  { %1972 = vtanh.f32 %v498_v34  ;;  %v1943_v34 = vld [vmem:[%s2455_s2 + $0x8] sm:$0xff] }
 0x1c1   :  { %1133 = vmatpush.bf16.msrb.mxu1 %v1937_v18  ;;  %1074 = vmatpush.bf16.msrb.mxu0 %v1943_v34 }
 0x1c3   :  { %v435_v35 = vpop.f32.mrf.mxu0 }
 0x1c4   :  { %v1942_v35 = vld [vmem:[%s2455_s2] sm:$0xff] }
 0x1c5   :  { %1134 = vmatpush.bf16.msrb.mxu1 %v1936_v26  ;;  %1075 = vmatpush.bf16.msrb.mxu0 %v1942_v35 }
 0x1c6   :  { %v1973_v36 = vpop.eup %1972 }
 0x1c7   :  { %v500_v37 = vpack.c.bf16 %v1973_v36, %v1973_v36  ;;  %v1957_v36 = vld [vmem:[%s2456_s1 + $0x38] sm:$0xff] }
 0x1c8   :  { %v977_v29 = vpop.f32.mrf.mxu3  ;;  %1290 = vmatpush.bf16.msrb.mxu3 %v1957_v36 }
 0x1c9   :  { %1507 = vst [vmem:[%s2459_s4 + $0x8] sm:$0xf] %v500_v37  ;;  %593 = vmatmul.bf16.vlgmr.msrb.gmra.mxu2 %v500_v37  ;;  %1135 = vmatpush.bf16.msrb.mxu1 %v1935_v28  ;;  %v1965_v37 = vld [vmem:[%s2455_s2 + $0x38] sm:$0xff] }
 0x1ca   :  { %1229 = vmatpush.bf16.msrb.mxu2 %v1965_v37 }
 0x1cc   :  { %1291 = vmatpush.bf16.msrb.mxu3 %v1956_v38 }
 0x1cd   :  { %1136 = vmatpush.bf16.msrb.mxu1 %v1934_v32 }
 0x1ce   :  { %1230 = vmatpush.bf16.msrb.mxu2 %v1964_v39 }
 0x1d0   :  { %v979_v30 = vpop.f32.mrf.mxu3  ;;  %1137 = vmatmul.bf16.vlgmr.msrb.gmra.mxu1 %v1706_v33  ;;  %1292 = vmatpush.bf16.msrb.mxu3 %v1955_v40 }
 0x1d2   :  { %1231 = vmatpush.bf16.msrb.mxu2 %v1963_v41 }
 0x1d6   :  { %1232 = vmatpush.bf16.msrb.mxu2 %v1962_v51 }
 0x1da   :  { %1233 = vmatpush.bf16.msrb.mxu2 %v1961_v53 }
 0x1de   :  { %1234 = vmatpush.bf16.msrb.mxu2 %v1960_v57 }
 0x24c   :  { %v594_v58 = vpop.f32.mrf.mxu2 }
 0x24d   :  { %v656_v59 = vadd.f32 %v655_v42, %v594_v58  ;;  %v1954_v42 = vld [vmem:[%s2456_s1 + $0x20] sm:$0xff]  ;;  %v1138_v55 = vpop.f32.mrf.mxu1 }
 0x24e   :  { %1293 = vmatpush.bf16.msrb.mxu3 %v1954_v42  ;;  %v1950_v58 = vld [vmem:[%s2456_s1] sm:$0xff] }
 0x24f   :  { %v659_v60 = vadd.f32 %v2139_v43, %v656_v59  ;;  %v1772_v59 = vld [vmem:[%s2457_s0 + $0x1c] sm:$0xf] }
 0x251   :  { %1974 = vtanh.f32 %v659_v60  ;;  %v1959_v60 = vld [vmem:[%s2455_s2 + $0x8] sm:$0xff] }
 0x252   :  { %1294 = vmatpush.bf16.msrb.mxu3 %v1953_v44  ;;  %1235 = vmatpush.bf16.msrb.mxu2 %v1959_v60 }
 0x254   :  { %v596_v61 = vpop.f32.mrf.mxu2 }
 0x255   :  { %v1140_v56 = vpop.f32.mrf.mxu1  ;;  %v1958_v61 = vld [vmem:[%s2455_s2] sm:$0xff] }
 0x256   :  { %1295 = vmatpush.bf16.msrb.mxu3 %v1952_v52  ;;  %1236 = vmatpush.bf16.msrb.mxu2 %v1958_v61 }
 0x257   :  { %v1975_v62 = vpop.eup %1974 }
 0x258   :  { %v661_v63 = vpack.c.bf16 %v1975_v62, %v1975_v62 }
 0x25a   :  { %1573 = vst [vmem:[%s2459_s4 + $0xc] sm:$0xf] %v661_v63  ;;  %754 = vmatmul.bf16.vlgmr.msra.gmra.mxu0 %v661_v63  ;;  %1296 = vmatpush.bf16.msrb.mxu3 %v1951_v54 }
 0x25e   :  { %1297 = vmatpush.bf16.msrb.mxu3 %v1950_v58 }
 0x261   :  { %1298 = vmatmul.bf16.vlgmr.msrb.gmra.mxu3 %v1772_v59 }
 0x2d7   :  { %v755_v19 = vpop.f32.mrf.mxu0 }
 0x2d8   :  { %v817_v20 = vadd.f32 %v816_v4, %v755_v19 }
 0x2da   :  { %v820_v21 = vadd.f32 %v2139_v43, %v817_v20 }
 0x2dc   :  { %1976 = vtanh.f32 %v820_v21 }
 0x2df   :  { %v757_v22 = vpop.f32.mrf.mxu0 }
 0x2e2   :  { %v1977_v23 = vpop.eup %1976 }
 0x2e3   :  { %v822_v24 = vpack.c.bf16 %v1977_v23, %v1977_v23 }
 0x2e4   :  { %v1299_v4 = vpop.f32.mrf.mxu3 }
 0x2e5   :  { %1639 = vst [vmem:[%s2459_s4 + $0x10] sm:$0xf] %v822_v24  ;;  %915 = vmatmul.bf16.vlgmr.msra.gmra.mxu2 %v822_v24 }
 0x2ec   :  { %v1301_v5 = vpop.f32.mrf.mxu3 }
 0x368   :  { %v916_v45 = vpop.f32.mrf.mxu2 }
 0x369   :  { %v978_v46 = vadd.f32 %v977_v29, %v916_v45 }
 0x36b   :  { %v981_v47 = vadd.f32 %v2139_v43, %v978_v46 }
 0x36d   :  { %1978 = vtanh.f32 %v981_v47 }
 0x370   :  { %v918_v48 = vpop.f32.mrf.mxu2 }
 0x373   :  { %v1979_v49 = vpop.eup %1978 }
 0x374   :  { %v983_v50 = vpack.c.bf16 %v1979_v49, %v1979_v49 }
 0x376   :  { %1705 = vst [vmem:[%s2459_s4 + $0x14] sm:$0xf] %v983_v50  ;;  %1076 = vmatmul.bf16.vlgmr.msrb.gmra.mxu0 %v983_v50 }
 0x3f3   :  { %v1077_v62 = vpop.f32.mrf.mxu0 }
 0x3f4   :  { %v1139_v63 = vadd.f32 %v1138_v55, %v1077_v62 }
 0x3f6   :  { %v1142_v0 = vadd.f32 %v2139_v43, %v1139_v63 }
 0x3f8   :  { %1980 = vtanh.f32 %v1142_v0 }
 0x3fb   :  { %v1079_v1 = vpop.f32.mrf.mxu0 }
 0x3fe   :  { %v1981_v2 = vpop.eup %1980 }
 0x3ff   :  { %v1144_v3 = vpack.c.bf16 %v1981_v2, %v1981_v2 }
 0x401   :  { %1771 = vst [vmem:[%s2459_s4 + $0x18] sm:$0xf] %v1144_v3  ;;  %1237 = vmatmul.bf16.vlgmr.msrb.gmra.mxu2 %v1144_v3 }
 0x484   :  { %v1238_v6 = vpop.f32.mrf.mxu2 }
 0x485   :  { %v1300_v7 = vadd.f32 %v1299_v4, %v1238_v6 }
 0x487   :  { %v1303_v8 = vadd.f32 %v2139_v43, %v1300_v7 }
 0x489   :  { %1982 = vtanh.f32 %v1303_v8 }
 0x48c   :  { %v1240_v9 = vpop.f32.mrf.mxu2 }
 0x48f   :  { %v1983_v10 = vpop.eup %1982 }
 0x490   :  { %v1305_v11 = vpack.c.bf16 %v1983_v10, %v1983_v10 }
 0x492   :  { %1837 = vst [vmem:[%s2459_s4 + $0x1c] sm:$0xf] %v1305_v11 }

</bundles_post_ra>
